<compile_context>
chip_gen: v7x
topology: tpu7x:2x2x1
jax: 0.10.0
libtpu: 0.0.40
codegen_flags: <defaults>
</compile_context>

<pallas_src>
import functools

import jax
import jax.numpy as jnp
import numpy as np
from jax.experimental import pallas as pl
from jax.experimental.pallas import tpu as pltpu


def _round_up(a, b):
    return -(-a // b) * b


def _lane_tile(s_len):
    """Largest lane tile in {512,384,256,128} dividing s_len (s_len % 128 == 0)."""
    for cand in (512, 384, 256, 128):
        if s_len % cand == 0:
            return cand
    return s_len


# ----------------------------------------------------------------------------
# Pass 1a (fused, stride==1): in-kernel im2col via shifted lane slices of the
# zero-padded flattened image + KH*KW small MXU matmuls, plus per-image
# per-channel sum / sum-of-squares (feeds BatchNorm training-mode statistics).
#   w_ref    : [KH*KW, Cout, Cin]  bf16  (resident)
#   x_ref    : [1, Cin, S_in]      bf16  (padded image, flattened, zero tail)
#   mask_ref : [1, S_out]          f32   (1.0 on valid output positions)
#   conv_ref : [1, Cout, S_out]    bf16
#   sum/ssq  : [1, Cout, 1]        f32
# ----------------------------------------------------------------------------
def conv_stats_fused_kernel(w_ref, x_ref, mask_ref, conv_ref, sum_ref, ssq_ref,
                            *, taps, s_out):
    acc = None
    for t, off in enumerate(taps):          # static unroll over KH*KW taps
        part = jnp.dot(w_ref[t], x_ref[0, :, off:off + s_out],
                       preferred_element_type=jnp.float32)     # [Cout, S_out]
        acc = part if acc is None else acc + part
    acc = acc * mask_ref[...]               # zero junk (padded-width / tail) columns
    conv_ref[...] = acc[None].astype(conv_ref.dtype)
    sum_ref[...] = jnp.sum(acc, axis=-1, keepdims=True)[None]
    ssq_ref[...] = jnp.sum(acc * acc, axis=-1, keepdims=True)[None]


# ----------------------------------------------------------------------------
# Pass 1b (fallback): host im2col, transposed conv-as-matmul + channel sums.
#   w_ref    : [Cout, K]        bf16
#   p_ref    : [1, K, ts]       bf16
#   conv_ref : [1, Cout, ts]    bf16
#   sum/ssq  : [1, Cout, 1]     f32  (accumulated across s-tiles)
# ----------------------------------------------------------------------------
def conv_stats_im2col_kernel(w_ref, p_ref, conv_ref, sum_ref, ssq_ref):
    s_idx = pl.program_id(1)

    acc = jnp.dot(w_ref[...], p_ref[0], preferred_element_type=jnp.float32)
    conv_ref[...] = acc[None].astype(conv_ref.dtype)

    @pl.when(s_idx == 0)
    def _():
        sum_ref[...] = jnp.zeros_like(sum_ref)
        ssq_ref[...] = jnp.zeros_like(ssq_ref)

    sum_ref[...] += jnp.sum(acc, axis=-1, keepdims=True)[None]
    ssq_ref[...] += jnp.sum(acc * acc, axis=-1, keepdims=True)[None]


# ----------------------------------------------------------------------------
# Pass 2: fused BatchNorm affine + activation (elementwise, lane-dense).
# ----------------------------------------------------------------------------
def bn_act_kernel(x_ref, scale_ref, shift_ref, alpha_ref, o_ref, *, activation):
    y = x_ref[...].astype(jnp.float32) * scale_ref[...] + shift_ref[...]
    if activation == "sigmoid":
        y = jax.nn.sigmoid(y)
    elif activation == "prelu":
        y = jnp.where(y > 0, y, alpha_ref[...] * y)
    o_ref[...] = y.astype(o_ref.dtype)


# ----------------------------------------------------------------------------
# Host-side glue.
# ----------------------------------------------------------------------------
def im2col_transposed(x, kh, kw, stride, padding, oh, ow, s_pad):
    """x: [N, Cin, H, W] -> patchesT [N, Cin*KH*KW, S_pad] (lane axis = spatial)."""
    n, cin, _, _ = x.shape
    xp = jnp.pad(x, ((0, 0), (0, 0), (padding, padding), (padding, padding)))
    taps = []
    for dy in range(kh):
        for dx in range(kw):
            taps.append(xp[:, :, dy: dy + stride * oh: stride,
                               dx: dx + stride * ow: stride])   # [N, Cin, OH, OW]
    pat = jnp.stack(taps, axis=2)                               # [N, Cin, KH*KW, OH, OW]
    pat = pat.reshape(n, cin * kh * kw, oh * ow)                # [N, K, S]
    if s_pad > oh * ow:
        pat = jnp.pad(pat, ((0, 0), (0, 0), (0, s_pad - oh * ow)))
    return pat


def _conv_stats_fused(x, conv_w, padding, oh, ow, wp, s_out_pad, s_in_pad,
                      vmem_limit):
    n, cin, h, w = x.shape
    cout, _, kh, kw = conv_w.shape
    hp = h + 2 * padding

    x_flat = jnp.pad(x, ((0, 0), (0, 0), (padding, padding), (padding, padding)))
    x_flat = x_flat.reshape(n, cin, hp * wp)
    x_flat = jnp.pad(x_flat, ((0, 0), (0, 0), (0, s_in_pad - hp * wp)))
    x_flat = x_flat.astype(jnp.bfloat16)                        # [N, Cin, S_in]

    # weights as [tap, Cout, Cin]; tap = dy*KW + dx matches `taps` below.
    w_taps = jnp.transpose(conv_w, (2, 3, 0, 1)).reshape(kh * kw, cout, cin)
    w_taps = w_taps.astype(jnp.bfloat16)

    # valid-output mask on the (OH x Wp) padded-width grid.
    idx = np.arange(s_out_pad)
    mask_np = ((idx < oh * wp) & ((idx % wp) < ow)).astype(np.float32)
    mask = jnp.asarray(mask_np)[None, :]                        # [1, S_out]

    taps = tuple(dy * wp + dx for dy in range(kh) for dx in range(kw))

    conv_t, part_sum, part_ssq = pl.pallas_call(
        functools.partial(conv_stats_fused_kernel, taps=taps, s_out=s_out_pad),
        out_shape=(
            jax.ShapeDtypeStruct((n, cout, s_out_pad), jnp.bfloat16),
            jax.ShapeDtypeStruct((n, cout, 1), jnp.float32),
            jax.ShapeDtypeStruct((n, cout, 1), jnp.float32),
        ),
        grid_spec=pltpu.PrefetchScalarGridSpec(
            num_scalar_prefetch=0,
            grid=(n,),
            in_specs=[
                pl.BlockSpec((kh * kw, cout, cin), lambda i: (0, 0, 0)),
                pl.BlockSpec((1, cin, s_in_pad), lambda i: (i, 0, 0)),
                pl.BlockSpec((1, s_out_pad), lambda i: (0, 0)),
            ],
            out_specs=(
                pl.BlockSpec((1, cout, s_out_pad), lambda i: (i, 0, 0)),
                pl.BlockSpec((1, cout, 1), lambda i: (i, 0, 0)),
                pl.BlockSpec((1, cout, 1), lambda i: (i, 0, 0)),
            ),
        ),
        compiler_params=pltpu.CompilerParams(
            dimension_semantics=("parallel",),
            vmem_limit_bytes=vmem_limit),
    )(w_taps, x_flat, mask)
    return conv_t, part_sum, part_ssq


def _conv_stats_im2col(x, conv_w, stride, padding, oh, ow, vmem_limit):
    n, cin, h, w = x.shape
    cout, _, kh, kw = conv_w.shape
    s = oh * ow
    k = cin * kh * kw

    ts = min(512, _round_up(s, 128))
    s_pad = _round_up(s, ts)
    s_tiles = s_pad // ts

    patches_t = im2col_transposed(x.astype(jnp.bfloat16), kh, kw, stride,
                                  padding, oh, ow, s_pad)       # [N, K, S_pad]
    w_mat = conv_w.reshape(cout, k).astype(jnp.bfloat16)        # [Cout, K]

    conv_t, part_sum, part_ssq = pl.pallas_call(
        conv_stats_im2col_kernel,
        out_shape=(
            jax.ShapeDtypeStruct((n, cout, s_pad), jnp.bfloat16),
            jax.ShapeDtypeStruct((n, cout, 1), jnp.float32),
            jax.ShapeDtypeStruct((n, cout, 1), jnp.float32),
        ),
        grid_spec=pltpu.PrefetchScalarGridSpec(
            num_scalar_prefetch=0,
            grid=(n, s_tiles),
            in_specs=[
                pl.BlockSpec((cout, k), lambda i, j: (0, 0)),
                pl.BlockSpec((1, k, ts), lambda i, j: (i, 0, j)),
            ],
            out_specs=(
                pl.BlockSpec((1, cout, ts), lambda i, j: (i, 0, j)),
                pl.BlockSpec((1, cout, 1), lambda i, j: (i, 0, 0)),
                pl.BlockSpec((1, cout, 1), lambda i, j: (i, 0, 0)),
            ),
        ),
        compiler_params=pltpu.CompilerParams(
            dimension_semantics=("parallel", "arbitrary"),
            vmem_limit_bytes=vmem_limit),
    )(w_mat, patches_t)
    return conv_t, part_sum, part_ssq


def _bn_act_apply(conv_t, scale, shift, alpha, activation, vmem_limit):
    n, cout, s_len = conv_t.shape
    ts = _lane_tile(s_len)
    s_tiles = s_len // ts
    return pl.pallas_call(
        functools.partial(bn_act_kernel, activation=activation),
        out_shape=jax.ShapeDtypeStruct((n, cout, s_len), jnp.float32),
        grid_spec=pltpu.PrefetchScalarGridSpec(
            num_scalar_prefetch=0,
            grid=(n, s_tiles),
            in_specs=[
                pl.BlockSpec((1, cout, ts), lambda i, j: (i, 0, j)),
                pl.BlockSpec((1, cout, 1), lambda i, j: (0, 0, 0)),
                pl.BlockSpec((1, cout, 1), lambda i, j: (0, 0, 0)),
                pl.BlockSpec((1, cout, 1), lambda i, j: (0, 0, 0)),
            ],
            out_specs=pl.BlockSpec((1, cout, ts), lambda i, j: (i, 0, j)),
        ),
        compiler_params=pltpu.CompilerParams(
            dimension_semantics=("parallel", "parallel"),
            vmem_limit_bytes=vmem_limit),
    )(conv_t, scale, shift, alpha)


def fl_en_module_forward(x, conv_w, conv_b, gamma, beta, *, stride, padding,
                         activation=None, prelu_a=0.25, eps=1e-5):
    """Pallas implementation of FL_En_Module.forward (train-mode BatchNorm)."""
    del conv_b  # a constant per-channel bias cancels exactly under train-mode BN
    n, cin, h, w = x.shape
    cout, _, kh, kw = conv_w.shape
    oh = (h + 2 * padding - kh) // stride + 1
    ow = (w + 2 * padding - kw) // stride + 1
    vmem_limit = 32 * 1024 * 1024

    # ---- pass 1: conv + per-image channel sums ---------------------------------
    fused_used = False
    if stride == 1:
        hp, wp = h + 2 * padding, w + 2 * padding
        max_off = (kh - 1) * wp + (kw - 1)
        s_out_pad = _round_up(oh * wp, 128)
        s_in_pad = _round_up(max(hp * wp, s_out_pad + max_off), 128)
        est_bytes = 2 * 2 * (cin * s_in_pad + cout * s_out_pad)  # double-buffered bf16
        if est_bytes <= 8 * 1024 * 1024:
            try:
                conv_t, part_sum, part_ssq = _conv_stats_fused(
                    x, conv_w, padding, oh, ow, wp, s_out_pad, s_in_pad,
                    vmem_limit)
                jax.block_until_ready((conv_t, part_sum, part_ssq))
                fused_used = True
            except Exception:   # lowering issue on this TPU gen -> safe fallback
                fused_used = False
    if not fused_used:
        conv_t, part_sum, part_ssq = _conv_stats_im2col(
            x, conv_w, stride, padding, oh, ow, vmem_limit)

    # ---- tiny scalar math on batch statistics (host glue) ----------------------
    m_real = n * oh * ow
    tot_sum = jnp.sum(part_sum, axis=0)                          # [Cout, 1]
    tot_ssq = jnp.sum(part_ssq, axis=0)
    mean = tot_sum / m_real
    var = tot_ssq / m_real - mean * mean                         # biased (train mode)
    inv_std = jax.lax.rsqrt(var + eps)
    scale = gamma.astype(jnp.float32).reshape(cout, 1) * inv_std
    shift = beta.astype(jnp.float32).reshape(cout, 1) - mean * scale
    alpha = jnp.broadcast_to(
        jnp.asarray(prelu_a, jnp.float32).reshape(-1, 1), (cout, 1))
    scale, shift, alpha = scale[None], shift[None], alpha[None]  # [1, Cout, 1]

    # ---- pass 2: fused BN affine + activation -----------------------------------
    out_t = _bn_act_apply(conv_t, scale, shift, alpha, activation, vmem_limit)

    # ---- free reshapes back to NCHW ---------------------------------------------
    if fused_used:
        # conv was computed on the (OH x Wp) padded-width grid
        return out_t[:, :, :oh * wp].reshape(n, cout, oh, wp)[:, :, :, :ow]
    return out_t[:, :, :oh * ow].reshape(n, cout, oh, ow)


# ----------------------------------------------------------------------------
# Pure-JAX reference for sanity checking (full f32, includes the conv bias).
# ----------------------------------------------------------------------------
def reference_forward(x, conv_w, conv_b, gamma, beta, *, stride, padding,
                      activation, prelu_a, eps=1e-5):
    y = jax.lax.conv_general_dilated(
        x, conv_w, window_strides=(stride, stride),
        padding=[(padding, padding), (padding, padding)],
        dimension_numbers=("NCHW", "OIHW", "NCHW"),
        precision=jax.lax.Precision.HIGHEST)
    y = y + conv_b.reshape(1, -1, 1, 1)
    mean = y.mean(axis=(0, 2, 3), keepdims=True)
    var = y.var(axis=(0, 2, 3), keepdims=True)
    y = (y - mean) * jax.lax.rsqrt(var + eps)
    y = y * gamma.reshape(1, -1, 1, 1) + beta.reshape(1, -1, 1, 1)
    if activation == "sigmoid":
        y = jax.nn.sigmoid(y)
    elif activation == "prelu":
        y = jnp.where(y > 0, y, prelu_a * y)
    return y


if __name__ == "__main__":
    # FL_En_Module(in_channels=4, out_channels=8, kernel_size=3, ...)
    N, CIN, H, W = 2, 4, 16, 16
    COUT, KH, KW = 8, 3, 3
    PRELU_A = 0.25            # nn.PReLU() default init

    key = jax.random.PRNGKey(0)
    kx, kw_, kb = jax.random.split(key, 3)

    x = jax.random.normal(kx, (N, CIN, H, W), dtype=jnp.float32)
    fan_in = CIN * KH * KW
    bound = 1.0 / np.sqrt(fan_in)                  # PyTorch Conv2d default init
    conv_w = jax.random.uniform(kw_, (COUT, CIN, KH, KW), jnp.float32,
                                -bound, bound)
    conv_b = jax.random.uniform(kb, (COUT,), jnp.float32, -bound, bound)
    gamma = jnp.ones((COUT,), jnp.float32)         # BatchNorm2d default weight
    beta = jnp.zeros((COUT,), jnp.float32)         # BatchNorm2d default bias

    configs = [
        (1, 1, "prelu"),     # stride=1 -> fused in-kernel-im2col path
        (2, 1, "sigmoid"),   # stride=2 -> host-im2col fallback path
    ]
    for stride, pad, act in configs:
        out = fl_en_module_forward(x, conv_w, conv_b, gamma, beta,
                                   stride=stride, padding=pad,
                                   activation=act, prelu_a=PRELU_A)
        out = jax.block_until_ready(out)
        ref = reference_forward(x, conv_w, conv_b, gamma, beta,
                                stride=stride, padding=pad,
                                activation=act, prelu_a=PRELU_A)
        # bf16 MXU inputs + bf16 intermediate vs. f32 HIGHEST reference.
        np.testing.assert_allclose(np.asarray(out), np.asarray(ref),
                                   atol=2e-2, rtol=2e-2)

    print("KERNEL_OK")
</pallas_src>

<mosaic_0001>
module attributes {stable_mosaic.version = 11 : i64} {
  func.func @conv_stats_fused_kernel(%arg0: i32, %arg1: memref<9x8x4xbf16, #tpu.memory_space<vmem>>, %arg2: memref<1x4x512xbf16, #tpu.memory_space<vmem>>, %arg3: memref<1x384xf32, #tpu.memory_space<vmem>>, %arg4: memref<1x8x384xbf16, #tpu.memory_space<vmem>>, %arg5: memref<1x8x1xf32, #tpu.memory_space<vmem>>, %arg6: memref<1x8x1xf32, #tpu.memory_space<vmem>>) attributes {dimension_semantics = [#tpu.dimension_semantics<parallel>], iteration_bounds = array<i64: 2>, scalar_prefetch = 0 : i64, scratch_operands = 0 : i64, tpu.core_type = #tpu.core_type<tc>, window_params = [{pipeline_mode = #tpu.pipeline_mode<synchronous>, transform_indices = @transform_0, window_bounds = array<i64: 9, 8, 4>}, {transform_indices = @transform_1, window_bounds = array<i64: 1, 4, 512>}, {pipeline_mode = #tpu.pipeline_mode<synchronous>, transform_indices = @transform_2, window_bounds = array<i64: 1, 384>}, {transform_indices = @transform_3, window_bounds = array<i64: 1, 8, 384>}, {transform_indices = @transform_4, window_bounds = array<i64: 1, 8, 1>}, {transform_indices = @transform_5, window_bounds = array<i64: 1, 8, 1>}]} {
    %c0 = arith.constant 0 : index
    %c0_0 = arith.constant 0 : index
    %c0_1 = arith.constant 0 : index
    %0 = vector.load %arg1[%c0, %c0_0, %c0_1] : memref<9x8x4xbf16, #tpu.memory_space<vmem>>, vector<1x8x4xbf16>
    %1 = vector.shape_cast %0 : vector<1x8x4xbf16> to vector<8x4xbf16>
    %c0_2 = arith.constant 0 : index
    %c0_3 = arith.constant 0 : index
    %c0_4 = arith.constant 0 : index
    %2 = vector.load %arg2[%c0_2, %c0_3, %c0_4] : memref<1x4x512xbf16, #tpu.memory_space<vmem>>, vector<1x4x384xbf16>
    %3 = vector.shape_cast %2 : vector<1x4x384xbf16> to vector<4x384xbf16>
    %cst = arith.constant dense<0.000000e+00> : vector<8x384xf32>
    %4 = tpu.matmul %1, %3, %cst {dimension_numbers = #tpu.dot_dimension_numbers<[1], [0], [0], [1], [0, 0, 1, 1], [], []>} : vector<8x4xbf16>, vector<4x384xbf16>, vector<8x384xf32> -> vector<8x384xf32>
    %c1 = arith.constant 1 : index
    %c0_5 = arith.constant 0 : index
    %c0_6 = arith.constant 0 : index
    %5 = vector.load %arg1[%c1, %c0_5, %c0_6] : memref<9x8x4xbf16, #tpu.memory_space<vmem>>, vector<1x8x4xbf16>
    %6 = vector.shape_cast %5 : vector<1x8x4xbf16> to vector<8x4xbf16>
    %c0_7 = arith.constant 0 : index
    %c0_8 = arith.constant 0 : index
    %c1_9 = arith.constant 1 : index
    %7 = vector.load %arg2[%c0_7, %c0_8, %c1_9] : memref<1x4x512xbf16, #tpu.memory_space<vmem>>, vector<1x4x384xbf16>
    %8 = vector.shape_cast %7 : vector<1x4x384xbf16> to vector<4x384xbf16>
    %cst_10 = arith.constant dense<0.000000e+00> : vector<8x384xf32>
    %9 = tpu.matmul %6, %8, %cst_10 {dimension_numbers = #tpu.dot_dimension_numbers<[1], [0], [0], [1], [0, 0, 1, 1], [], []>} : vector<8x4xbf16>, vector<4x384xbf16>, vector<8x384xf32> -> vector<8x384xf32>
    %10 = arith.addf %4, %9 : vector<8x384xf32>
    %c2 = arith.constant 2 : index
    %c0_11 = arith.constant 0 : index
    %c0_12 = arith.constant 0 : index
    %11 = vector.load %arg1[%c2, %c0_11, %c0_12] : memref<9x8x4xbf16, #tpu.memory_space<vmem>>, vector<1x8x4xbf16>
    %12 = vector.shape_cast %11 : vector<1x8x4xbf16> to vector<8x4xbf16>
    %c0_13 = arith.constant 0 : index
    %c0_14 = arith.constant 0 : index
    %c2_15 = arith.constant 2 : index
    %13 = vector.load %arg2[%c0_13, %c0_14, %c2_15] : memref<1x4x512xbf16, #tpu.memory_space<vmem>>, vector<1x4x384xbf16>
    %14 = vector.shape_cast %13 : vector<1x4x384xbf16> to vector<4x384xbf16>
    %cst_16 = arith.constant dense<0.000000e+00> : vector<8x384xf32>
    %15 = tpu.matmul %12, %14, %cst_16 {dimension_numbers = #tpu.dot_dimension_numbers<[1], [0], [0], [1], [0, 0, 1, 1], [], []>} : vector<8x4xbf16>, vector<4x384xbf16>, vector<8x384xf32> -> vector<8x384xf32>
    %16 = arith.addf %10, %15 : vector<8x384xf32>
    %c3 = arith.constant 3 : index
    %c0_17 = arith.constant 0 : index
    %c0_18 = arith.constant 0 : index
    %17 = vector.load %arg1[%c3, %c0_17, %c0_18] : memref<9x8x4xbf16, #tpu.memory_space<vmem>>, vector<1x8x4xbf16>
    %18 = vector.shape_cast %17 : vector<1x8x4xbf16> to vector<8x4xbf16>
    %c0_19 = arith.constant 0 : index
    %c0_20 = arith.constant 0 : index
    %c18 = arith.constant 18 : index
    %19 = vector.load %arg2[%c0_19, %c0_20, %c18] : memref<1x4x512xbf16, #tpu.memory_space<vmem>>, vector<1x4x384xbf16>
    %20 = vector.shape_cast %19 : vector<1x4x384xbf16> to vector<4x384xbf16>
    %cst_21 = arith.constant dense<0.000000e+00> : vector<8x384xf32>
    %21 = tpu.matmul %18, %20, %cst_21 {dimension_numbers = #tpu.dot_dimension_numbers<[1], [0], [0], [1], [0, 0, 1, 1], [], []>} : vector<8x4xbf16>, vector<4x384xbf16>, vector<8x384xf32> -> vector<8x384xf32>
    %22 = arith.addf %16, %21 : vector<8x384xf32>
    %c4 = arith.constant 4 : index
    %c0_22 = arith.constant 0 : index
    %c0_23 = arith.constant 0 : index
    %23 = vector.load %arg1[%c4, %c0_22, %c0_23] : memref<9x8x4xbf16, #tpu.memory_space<vmem>>, vector<1x8x4xbf16>
    %24 = vector.shape_cast %23 : vector<1x8x4xbf16> to vector<8x4xbf16>
    %c0_24 = arith.constant 0 : index
    %c0_25 = arith.constant 0 : index
    %c19 = arith.constant 19 : index
    %25 = vector.load %arg2[%c0_24, %c0_25, %c19] : memref<1x4x512xbf16, #tpu.memory_space<vmem>>, vector<1x4x384xbf16>
    %26 = vector.shape_cast %25 : vector<1x4x384xbf16> to vector<4x384xbf16>
    %cst_26 = arith.constant dense<0.000000e+00> : vector<8x384xf32>
    %27 = tpu.matmul %24, %26, %cst_26 {dimension_numbers = #tpu.dot_dimension_numbers<[1], [0], [0], [1], [0, 0, 1, 1], [], []>} : vector<8x4xbf16>, vector<4x384xbf16>, vector<8x384xf32> -> vector<8x384xf32>
    %28 = arith.addf %22, %27 : vector<8x384xf32>
    %c5 = arith.constant 5 : index
    %c0_27 = arith.constant 0 : index
    %c0_28 = arith.constant 0 : index
    %29 = vector.load %arg1[%c5, %c0_27, %c0_28] : memref<9x8x4xbf16, #tpu.memory_space<vmem>>, vector<1x8x4xbf16>
    %30 = vector.shape_cast %29 : vector<1x8x4xbf16> to vector<8x4xbf16>
    %c0_29 = arith.constant 0 : index
    %c0_30 = arith.constant 0 : index
    %c20 = arith.constant 20 : index
    %31 = vector.load %arg2[%c0_29, %c0_30, %c20] : memref<1x4x512xbf16, #tpu.memory_space<vmem>>, vector<1x4x384xbf16>
    %32 = vector.shape_cast %31 : vector<1x4x384xbf16> to vector<4x384xbf16>
    %cst_31 = arith.constant dense<0.000000e+00> : vector<8x384xf32>
    %33 = tpu.matmul %30, %32, %cst_31 {dimension_numbers = #tpu.dot_dimension_numbers<[1], [0], [0], [1], [0, 0, 1, 1], [], []>} : vector<8x4xbf16>, vector<4x384xbf16>, vector<8x384xf32> -> vector<8x384xf32>
    %34 = arith.addf %28, %33 : vector<8x384xf32>
    %c6 = arith.constant 6 : index
    %c0_32 = arith.constant 0 : index
    %c0_33 = arith.constant 0 : index
    %35 = vector.load %arg1[%c6, %c0_32, %c0_33] : memref<9x8x4xbf16, #tpu.memory_space<vmem>>, vector<1x8x4xbf16>
    %36 = vector.shape_cast %35 : vector<1x8x4xbf16> to vector<8x4xbf16>
    %c0_34 = arith.constant 0 : index
    %c0_35 = arith.constant 0 : index
    %c36 = arith.constant 36 : index
    %37 = vector.load %arg2[%c0_34, %c0_35, %c36] : memref<1x4x512xbf16, #tpu.memory_space<vmem>>, vector<1x4x384xbf16>
    %38 = vector.shape_cast %37 : vector<1x4x384xbf16> to vector<4x384xbf16>
    %cst_36 = arith.constant dense<0.000000e+00> : vector<8x384xf32>
    %39 = tpu.matmul %36, %38, %cst_36 {dimension_numbers = #tpu.dot_dimension_numbers<[1], [0], [0], [1], [0, 0, 1, 1], [], []>} : vector<8x4xbf16>, vector<4x384xbf16>, vector<8x384xf32> -> vector<8x384xf32>
    %40 = arith.addf %34, %39 : vector<8x384xf32>
    %c7 = arith.constant 7 : index
    %c0_37 = arith.constant 0 : index
    %c0_38 = arith.constant 0 : index
    %41 = vector.load %arg1[%c7, %c0_37, %c0_38] : memref<9x8x4xbf16, #tpu.memory_space<vmem>>, vector<1x8x4xbf16>
    %42 = vector.shape_cast %41 : vector<1x8x4xbf16> to vector<8x4xbf16>
    %c0_39 = arith.constant 0 : index
    %c0_40 = arith.constant 0 : index
    %c37 = arith.constant 37 : index
    %43 = vector.load %arg2[%c0_39, %c0_40, %c37] : memref<1x4x512xbf16, #tpu.memory_space<vmem>>, vector<1x4x384xbf16>
    %44 = vector.shape_cast %43 : vector<1x4x384xbf16> to vector<4x384xbf16>
    %cst_41 = arith.constant dense<0.000000e+00> : vector<8x384xf32>
    %45 = tpu.matmul %42, %44, %cst_41 {dimension_numbers = #tpu.dot_dimension_numbers<[1], [0], [0], [1], [0, 0, 1, 1], [], []>} : vector<8x4xbf16>, vector<4x384xbf16>, vector<8x384xf32> -> vector<8x384xf32>
    %46 = arith.addf %40, %45 : vector<8x384xf32>
    %c8 = arith.constant 8 : index
    %c0_42 = arith.constant 0 : index
    %c0_43 = arith.constant 0 : index
    %47 = vector.load %arg1[%c8, %c0_42, %c0_43] : memref<9x8x4xbf16, #tpu.memory_space<vmem>>, vector<1x8x4xbf16>
    %48 = vector.shape_cast %47 : vector<1x8x4xbf16> to vector<8x4xbf16>
    %c0_44 = arith.constant 0 : index
    %c0_45 = arith.constant 0 : index
    %c38 = arith.constant 38 : index
    %49 = vector.load %arg2[%c0_44, %c0_45, %c38] : memref<1x4x512xbf16, #tpu.memory_space<vmem>>, vector<1x4x384xbf16>
    %50 = vector.shape_cast %49 : vector<1x4x384xbf16> to vector<4x384xbf16>
    %cst_46 = arith.constant dense<0.000000e+00> : vector<8x384xf32>
    %51 = tpu.matmul %48, %50, %cst_46 {dimension_numbers = #tpu.dot_dimension_numbers<[1], [0], [0], [1], [0, 0, 1, 1], [], []>} : vector<8x4xbf16>, vector<4x384xbf16>, vector<8x384xf32> -> vector<8x384xf32>
    %52 = arith.addf %46, %51 : vector<8x384xf32>
    %c0_47 = arith.constant 0 : index
    %c0_48 = arith.constant 0 : index
    %53 = vector.load %arg3[%c0_47, %c0_48] : memref<1x384xf32, #tpu.memory_space<vmem>>, vector<1x384xf32>
    %54 = vector.broadcast %53 : vector<1x384xf32> to vector<8x384xf32>
    %55 = arith.mulf %52, %54 : vector<8x384xf32>
    %56 = vector.shape_cast %55 : vector<8x384xf32> to vector<1x8x384xf32>
    %57 = arith.truncf %56 : vector<1x8x384xf32> to vector<1x8x384xbf16>
    %c0_49 = arith.constant 0 : index
    %c0_50 = arith.constant 0 : index
    %c0_51 = arith.constant 0 : index
    %58 = vector.load %arg4[%c0_49, %c0_50, %c0_51] : memref<1x8x384xbf16, #tpu.memory_space<vmem>>, vector<1x8x384xbf16>
    tpu.vector_store %arg4[%c0_49, %c0_50, %c0_51], %57 {strides = array<i32>} : memref<1x8x384xbf16, #tpu.memory_space<vmem>>, vector<1x8x384xbf16>,
    %cst_52 = arith.constant dense<0.000000e+00> : vector<8xf32>
    %59 = vector.multi_reduction <add>, %55, %cst_52 [1] : vector<8x384xf32> to vector<8xf32>
    %60 = vector.shape_cast %59 : vector<8xf32> to vector<8x1xf32>
    %61 = vector.shape_cast %60 : vector<8x1xf32> to vector<1x8x1xf32>
    %c0_53 = arith.constant 0 : index
    %c0_54 = arith.constant 0 : index
    %c0_55 = arith.constant 0 : index
    %62 = vector.load %arg5[%c0_53, %c0_54, %c0_55] : memref<1x8x1xf32, #tpu.memory_space<vmem>>, vector<1x8x1xf32>
    tpu.vector_store %arg5[%c0_53, %c0_54, %c0_55], %61 {strides = array<i32>} : memref<1x8x1xf32, #tpu.memory_space<vmem>>, vector<1x8x1xf32>,
    %63 = arith.mulf %55, %55 : vector<8x384xf32>
    %cst_56 = arith.constant dense<0.000000e+00> : vector<8xf32>
    %64 = vector.multi_reduction <add>, %63, %cst_56 [1] : vector<8x384xf32> to vector<8xf32>
    %65 = vector.shape_cast %64 : vector<8xf32> to vector<8x1xf32>
    %66 = vector.shape_cast %65 : vector<8x1xf32> to vector<1x8x1xf32>
    %c0_57 = arith.constant 0 : index
    %c0_58 = arith.constant 0 : index
    %c0_59 = arith.constant 0 : index
    %67 = vector.load %arg6[%c0_57, %c0_58, %c0_59] : memref<1x8x1xf32, #tpu.memory_space<vmem>>, vector<1x8x1xf32>
    tpu.vector_store %arg6[%c0_57, %c0_58, %c0_59], %66 {strides = array<i32>} : memref<1x8x1xf32, #tpu.memory_space<vmem>>, vector<1x8x1xf32>,
    return
  }
  func.func @transform_0(%arg0: i32) -> (i32, i32, i32) {
    %c0_i32 = arith.constant 0 : i32
    %c0_i32_0 = arith.constant 0 : i32
    %c0_i32_1 = arith.constant 0 : i32
    %c0_i32_2 = arith.constant 0 : i32
    return %c0_i32, %c0_i32_0, %c0_i32_1 : i32, i32, i32
  }
  func.func @transform_1(%arg0: i32) -> (i32, i32, i32) {
    %c0_i32 = arith.constant 0 : i32
    %c0_i32_0 = arith.constant 0 : i32
    %c0_i32_1 = arith.constant 0 : i32
    return %arg0, %c0_i32, %c0_i32_0 : i32, i32, i32
  }
  func.func @transform_2(%arg0: i32) -> (i32, i32) {
    %c0_i32 = arith.constant 0 : i32
    %c0_i32_0 = arith.constant 0 : i32
    %c0_i32_1 = arith.constant 0 : i32
    return %c0_i32, %c0_i32_0 : i32, i32
  }
  func.func @transform_3(%arg0: i32) -> (i32, i32, i32) {
    %c0_i32 = arith.constant 0 : i32
    %c0_i32_0 = arith.constant 0 : i32
    %c0_i32_1 = arith.constant 0 : i32
    return %arg0, %c0_i32, %c0_i32_0 : i32, i32, i32
  }
  func.func @transform_4(%arg0: i32) -> (i32, i32, i32) {
    %c0_i32 = arith.constant 0 : i32
    %c0_i32_0 = arith.constant 0 : i32
    %c0_i32_1 = arith.constant 0 : i32
    return %arg0, %c0_i32, %c0_i32_0 : i32, i32, i32
  }
  func.func @transform_5(%arg0: i32) -> (i32, i32, i32) {
    %c0_i32 = arith.constant 0 : i32
    %c0_i32_0 = arith.constant 0 : i32
    %c0_i32_1 = arith.constant 0 : i32
    return %arg0, %c0_i32, %c0_i32_0 : i32, i32, i32
  }
}

module attributes {stable_mosaic.version = 11 : i64} {
  func.func @conv_stats_im2col_kernel(%arg0: i32, %arg1: i32, %arg2: memref<8x36xbf16, #tpu.memory_space<vmem>>, %arg3: memref<1x36x256xbf16, #tpu.memory_space<vmem>>, %arg4: memref<1x8x256xbf16, #tpu.memory_space<vmem>>, %arg5: memref<1x8x1xf32, #tpu.memory_space<vmem>>, %arg6: memref<1x8x1xf32, #tpu.memory_space<vmem>>) attributes {dimension_semantics = [#tpu.dimension_semantics<parallel>, #tpu.dimension_semantics<arbitrary>], iteration_bounds = array<i64: 2, 1>, scalar_prefetch = 0 : i64, scratch_operands = 0 : i64, tpu.core_type = #tpu.core_type<tc>, window_params = [{pipeline_mode = #tpu.pipeline_mode<synchronous>, transform_indices = @transform_0, window_bounds = array<i64: 8, 36>}, {transform_indices = @transform_1, window_bounds = array<i64: 1, 36, 256>}, {transform_indices = @transform_2, window_bounds = array<i64: 1, 8, 256>}, {transform_indices = @transform_3, window_bounds = array<i64: 1, 8, 1>}, {transform_indices = @transform_4, window_bounds = array<i64: 1, 8, 1>}]} {
    %c0 = arith.constant 0 : index
    %c0_0 = arith.constant 0 : index
    %0 = vector.load %arg2[%c0, %c0_0] : memref<8x36xbf16, #tpu.memory_space<vmem>>, vector<8x36xbf16>
    %c0_1 = arith.constant 0 : index
    %c0_2 = arith.constant 0 : index
    %c0_3 = arith.constant 0 : index
    %1 = vector.load %arg3[%c0_1, %c0_2, %c0_3] : memref<1x36x256xbf16, #tpu.memory_space<vmem>>, vector<1x36x256xbf16>
    %2 = vector.shape_cast %1 : vector<1x36x256xbf16> to vector<36x256xbf16>
    %cst = arith.constant dense<0.000000e+00> : vector<8x256xf32>
    %3 = tpu.matmul %0, %2, %cst {dimension_numbers = #tpu.dot_dimension_numbers<[1], [0], [0], [1], [0, 0, 1, 1], [], []>} : vector<8x36xbf16>, vector<36x256xbf16>, vector<8x256xf32> -> vector<8x256xf32>
    %4 = vector.shape_cast %3 : vector<8x256xf32> to vector<1x8x256xf32>
    %5 = arith.truncf %4 : vector<1x8x256xf32> to vector<1x8x256xbf16>
    %c0_4 = arith.constant 0 : index
    %c0_5 = arith.constant 0 : index
    %c0_6 = arith.constant 0 : index
    %6 = vector.load %arg4[%c0_4, %c0_5, %c0_6] : memref<1x8x256xbf16, #tpu.memory_space<vmem>>, vector<1x8x256xbf16>
    tpu.vector_store %arg4[%c0_4, %c0_5, %c0_6], %5 {strides = array<i32>} : memref<1x8x256xbf16, #tpu.memory_space<vmem>>, vector<1x8x256xbf16>,
    %c0_i32 = arith.constant 0 : i32
    %7 = arith.cmpi eq, %arg1, %c0_i32 : i32
    %8 = arith.extui %7 : i1 to i32
    %c0_i32_7 = arith.constant 0 : i32
    %9 = arith.cmpi ne, %8, %c0_i32_7 : i32
    scf.if %9 {
      %cst_22 = arith.constant 0.000000e+00 : f32
      %23 = vector.broadcast %cst_22 : f32 to vector<1x8x1xf32>
      %c0_23 = arith.constant 0 : index
      %c0_24 = arith.constant 0 : index
      %c0_25 = arith.constant 0 : index
      %24 = vector.load %arg5[%c0_23, %c0_24, %c0_25] : memref<1x8x1xf32, #tpu.memory_space<vmem>>, vector<1x8x1xf32>
      tpu.vector_store %arg5[%c0_23, %c0_24, %c0_25], %23 {strides = array<i32>} : memref<1x8x1xf32, #tpu.memory_space<vmem>>, vector<1x8x1xf32>,
      %cst_26 = arith.constant 0.000000e+00 : f32
      %25 = vector.broadcast %cst_26 : f32 to vector<1x8x1xf32>
      %c0_27 = arith.constant 0 : index
      %c0_28 = arith.constant 0 : index
      %c0_29 = arith.constant 0 : index
      %26 = vector.load %arg6[%c0_27, %c0_28, %c0_29] : memref<1x8x1xf32, #tpu.memory_space<vmem>>, vector<1x8x1xf32>
      tpu.vector_store %arg6[%c0_27, %c0_28, %c0_29], %25 {strides = array<i32>} : memref<1x8x1xf32, #tpu.memory_space<vmem>>, vector<1x8x1xf32>,
    } else {
    }
    %c0_8 = arith.constant 0 : index
    %c0_9 = arith.constant 0 : index
    %c0_10 = arith.constant 0 : index
    %10 = vector.load %arg5[%c0_8, %c0_9, %c0_10] : memref<1x8x1xf32, #tpu.memory_space<vmem>>, vector<1x8x1xf32>
    %cst_11 = arith.constant dense<0.000000e+00> : vector<8xf32>
    %11 = vector.multi_reduction <add>, %3, %cst_11 [1] : vector<8x256xf32> to vector<8xf32>
    %12 = vector.shape_cast %11 : vector<8xf32> to vector<8x1xf32>
    %13 = vector.shape_cast %12 : vector<8x1xf32> to vector<1x8x1xf32>
    %14 = arith.addf %10, %13 : vector<1x8x1xf32>
    %c0_12 = arith.constant 0 : index
    %c0_13 = arith.constant 0 : index
    %c0_14 = arith.constant 0 : index
    %15 = vector.load %arg5[%c0_12, %c0_13, %c0_14] : memref<1x8x1xf32, #tpu.memory_space<vmem>>, vector<1x8x1xf32>
    tpu.vector_store %arg5[%c0_12, %c0_13, %c0_14], %14 {strides = array<i32>} : memref<1x8x1xf32, #tpu.memory_space<vmem>>, vector<1x8x1xf32>,
    %c0_15 = arith.constant 0 : index
    %c0_16 = arith.constant 0 : index
    %c0_17 = arith.constant 0 : index
    %16 = vector.load %arg6[%c0_15, %c0_16, %c0_17] : memref<1x8x1xf32, #tpu.memory_space<vmem>>, vector<1x8x1xf32>
    %17 = arith.mulf %3, %3 : vector<8x256xf32>
    %cst_18 = arith.constant dense<0.000000e+00> : vector<8xf32>
    %18 = vector.multi_reduction <add>, %17, %cst_18 [1] : vector<8x256xf32> to vector<8xf32>
    %19 = vector.shape_cast %18 : vector<8xf32> to vector<8x1xf32>
    %20 = vector.shape_cast %19 : vector<8x1xf32> to vector<1x8x1xf32>
    %21 = arith.addf %16, %20 : vector<1x8x1xf32>
    %c0_19 = arith.constant 0 : index
    %c0_20 = arith.constant 0 : index
    %c0_21 = arith.constant 0 : index
    %22 = vector.load %arg6[%c0_19, %c0_20, %c0_21] : memref<1x8x1xf32, #tpu.memory_space<vmem>>, vector<1x8x1xf32>
    tpu.vector_store %arg6[%c0_19, %c0_20, %c0_21], %21 {strides = array<i32>} : memref<1x8x1xf32, #tpu.memory_space<vmem>>, vector<1x8x1xf32>,
    return
  }
  func.func @transform_0(%arg0: i32, %arg1: i32) -> (i32, i32) {
    %c0_i32 = arith.constant 0 : i32
    %c0_i32_0 = arith.constant 0 : i32
    %c0_i32_1 = arith.constant 0 : i32
    return %c0_i32, %c0_i32_0 : i32, i32
  }
  func.func @transform_1(%arg0: i32, %arg1: i32) -> (i32, i32, i32) {
    %c0_i32 = arith.constant 0 : i32
    %c0_i32_0 = arith.constant 0 : i32
    return %arg0, %c0_i32, %arg1 : i32, i32, i32
  }
  func.func @transform_2(%arg0: i32, %arg1: i32) -> (i32, i32, i32) {
    %c0_i32 = arith.constant 0 : i32
    %c0_i32_0 = arith.constant 0 : i32
    return %arg0, %c0_i32, %arg1 : i32, i32, i32
  }
  func.func @transform_3(%arg0: i32, %arg1: i32) -> (i32, i32, i32) {
    %c0_i32 = arith.constant 0 : i32
    %c0_i32_0 = arith.constant 0 : i32
    %c0_i32_1 = arith.constant 0 : i32
    return %arg0, %c0_i32, %c0_i32_0 : i32, i32, i32
  }
  func.func @transform_4(%arg0: i32, %arg1: i32) -> (i32, i32, i32) {
    %c0_i32 = arith.constant 0 : i32
    %c0_i32_0 = arith.constant 0 : i32
    %c0_i32_1 = arith.constant 0 : i32
    return %arg0, %c0_i32, %c0_i32_0 : i32, i32, i32
  }
}

</mosaic_0001>

<bundles_post_ra>
// kernel: tpu_custom_call.1
= control target key start
LH: loop header
LB: loop body
LE: loop exit
PB: predicated region body
PF: predicated region fallthrough
CT: control target
= control target key end

     0   :  { %11 = vsyncpa [#allocation3], 0  ;;  %s2174_s0 = inlined_call_operand.vmem [shape: bf16[9,8,4], index: 0, kind: input, shape index: {}]   ;;  %s2175_s1 = inlined_call_operand.vmem [shape: bf16[2,4,512], index: 1, kind: input, shape index: {}]   ;;  %s2176_s2 = inlined_call_operand.vmem [shape: f32[1,384], index: 2, kind: input, shape index: {}]   ;;  %s2177_s3 = inlined_call_operand.hbm [shape: bf16[2,8,384], index: 3, kind: output, shape index: {0}]   ;;  %s2178_s4 = inlined_call_operand.vmem [shape: f32[2,8,1], index: 4, kind: output, shape index: {1}]   ;;  %s2179_s5 = inlined_call_operand.vmem [shape: f32[2,8,1], index: 5, kind: output, shape index: {2}]  }
   0x1   :  { %13 = vsyncpa [#allocation3 + $0x1], 0  ;;  %s1922_s18 = smov 0   ;;  %s1924_s19 = smov 0  }
   0x2   :  { %s1926_s20 = smov 0   ;;  %s1928_s21 = smov 0  }
   0x3 LB: > { %s1943_s22 = sadd.s32 4294967295, %s1877_s21   ;;  %s1573_s23 = sadd.s32 4294967294, %s1877_s21   ;;  %s1877_s21 = sphi %s1928_s21, %s2185_s21   ;;  %s1873_s20 = sphi %s1926_s20, %s2184_s20   ;;  %s1869_s19 = sphi %s1924_s19, %s2183_s19   ;;  %s1865_s18 = sphi %s1922_s18, %s2182_s18  }
   0x4   : > { %s1947_s24 = sadd.s32 1, %s1877_s21   ;;  %s94_s25 = sadd.s32 1, %s1873_s20 }
   0x5   : > { %s91_s26 = ssub.s32 %s1877_s21, %s1947_s24  ;;  %p104_p0 = scmp.ne.s32.totalorder %s1873_s20, %s1869_s19 }
   0x6   : > { %p92_p1 = scmp.eq.s32.totalorder %s91_s26, 0  ;;  %p105_p2 = scmp.eq.s32.totalorder %s1943_s22, 1 }
   0x7   : > { %p110_p3 = scmp.ne.s32.totalorder %s1869_s19, %s1865_s18  ;;  %p111_p4 = scmp.eq.s32.totalorder %s1573_s23, 1 }
   0x8   : > { %s1958_s27 = scalar_select %p92_p1, %s1873_s20, %s94_s25  }
   0x9   : > { %p1960_p5 = por %p105_p2, %p104_p0  ;;  %p1964_p6 = por %p111_p4, %p110_p3 }
   0xa   : > { %p1576_p7 = scmp.ge.s32.totalorder %s1877_s21, 1  ;;  %p195_p8 = scmp.lt.s32.totalorder %s1877_s21, 3 }
   0xc   : > { %p196_p9 = pnand %p1576_p7, %p195_p8 }
   0xd   : > { %p231_p10 = scmp.lt.s32.totalorder (!%p196_p9), %s1943_s22, 1  ;;  %v255_v0 = vlaneseq (!%p196_p9)  ;;  %v1879_v1 = vmov (!%p196_p9), 1983009808   ;;  %v1880_v5 = vmov (!%p196_p9), 0.0   ;;  %v1881_v6 = vmov (!%p196_p9), 0   ;;  %s1883_s10 = smov (!%p196_p9), 127  }
   0xe   : > { %199 = sbr.rel (%p196_p9) target bundleno = 612 (0x264), region = 32  ;;  %v253_v2 = vunpack.c.l.s4 (!%p196_p9), %v1879_v1  ;;  %1642 = vmatprep.subr.bf16.mxu1 (!%p196_p9), %v1880_v5  ;;  %326 = vmatprep.mubr.bf16.mxu0 (!%p196_p9), %v1881_v6  ;;  %vm1882_vm0 = vmmov (!%p196_p9), 0   ;;  %s1884_s11 = smov (!%p196_p9), 126   ;;  %vm276_vm1 = vcmask (!%p196_p9), 1039360   ;;  %vm284_vm2 = vcmask (!%p196_p9), 1041408  }
   0xf   : > { %v1972_v3 = vshrl.u32 (!%p196_p9), %v255_v0, 7  ;;  %1644 = vmatprep.mubr.msk.bf16.mxu1 (!%p196_p9), %vm1882_vm0, %v1880_v5  ;;  %s1885_s12 = smov (!%p196_p9), 110   ;;  %s1886_s13 = smov (!%p196_p9), 109   ;;  %v1581_v27 = vld [vmem:[%s2174_s0 + $0x4] sm:$0xf] (!%p196_p9)  ;;  %vm280_vm3 = vcmask (!%p196_p9), 31744  }
  0x10   : > { %v254_v4 = vunpack.c.0.s8 (!%p196_p9), %v253_v2  ;;  %s1887_s14 = smov (!%p196_p9), 108   ;;  %s1888_s15 = smov (!%p196_p9), 92   ;;  %vm514_vm4 = vcmask (!%p196_p9), 1031168   ;;  %vm643_vm5 = vcmask (!%p196_p9), 900096   ;;  %v245_v40 = vld [vmem:[%s2174_s0] sm:$0xf] (!%p196_p9) }
  0x11   : > { %s1889_s16 = smov (!%p196_p9), 91   ;;  %s1890_s17 = smov (!%p196_p9), 90   ;;  %vm772_vm6 = vcmask (!%p196_p9), 891904   ;;  %v1588_v51 = vld [vmem:[%s2174_s0 + $0x8] sm:$0xf] (!%p196_p9)  ;;  %vm901_vm7 = vcmask (!%p196_p9), 883712  }
  0x12   : > { %v257_v7 = vsub.s32 (!%p196_p9), %v254_v4, %v1972_v3  ;;  %v1592_v61 = vld [vmem:[%s2174_s0 + $0xc] sm:$0xf] (!%p196_p9)  ;;  %vm1030_vm8 = vcmask (!%p196_p9), 752640   ;;  %vm1159_vm9 = vcmask (!%p196_p9), 744448   ;;  %vm1288_vm10 = vcmask (!%p196_p9), 736256   ;;  %s216_s8 = sand.u32 (!%p196_p9), 1, %s1869_s19  }
  0x13   : > { %s1891_s23 = smov (!%p196_p9), [#allocation2]  }
  0x14   : > { %s1819_s25 = sshll.u32 (!%p196_p9), %s1891_s23, 4  ;;  %s1820_s25 = int_to_ptr.vmem [resolvable:$false] %s1819_s25 }
  0x15   : > { %s232_s30 = scalar_select %p231_p10, %s1943_s22, 1 }
  0x16   : > { %s1821_s26 = scalar_lea.vmem %s1820_s25, 384 }
  0x17   : > { %s1976_s6 = sshll.u32 %s232_s30, 3 }
  0x18   : > { %s235_s9 = scalar_lea.vmem %s2175_s1, %s1976_s6 }
  0x19   : > { %v249_v8 = vld [vmem:[%s235_s9] sm:$0xff] }
  0x1a   : > { %v246_v9 = vld [vmem:[%s235_s9] sm:$0x3f]  ;;  %v258_v10 = vrot.slane %v249_v8, %v257_v7  ;;  %v251_v11 = vcombine.high %v249_v8, %v249_v8  ;;  %s1760_s9 = smul.u32 12, %s216_s8 }
  0x1b   : > { %v1985_v12 = vrot.slane %v246_v9, %v257_v7  ;;  %v376_v13 = vcombine.high %v246_v9, %v246_v9 }
  0x1c   : > { %268 = vrot.lane.b32.xlu0 %v258_v10, %s1883_s10  ;;  %v266_v14 = vcombine.high %v258_v10, %v258_v10  ;;  %v265_v15 = vrot.slane %v251_v11, %v257_v7 }
  0x1d   : > { %v390_v16 = vrot.slane %v376_v13, %v257_v7  ;;  %v391_v21 = vcombine.high %v1985_v12, %v1985_v12  ;;  %v396_v29 = vsel %vm284_vm2, %v1985_v12, 0 }
  0x1e   : > { %272 = vrot.lane.b32.xlu1 %v265_v15, %s1883_s10  ;;  %v267_v17 = vcombine.high %v265_v15, %v265_v15 }
  0x1f   : > { %v402_v31 = vsel %vm284_vm2, %v390_v16, 0 }
  0x20   : > { %270 = vrot.lane.b32.xlu0 %v266_v14, %s1883_s10 }
  0x22   : > { %274 = vrot.lane.b32.xlu1 %v267_v17, %s1883_s10  ;;  %s218_s10 = scalar_lea.vmem [#allocation2], %s1760_s9 }
  0x24   : > { %506 = vrot.lane.b32.xlu0 %v258_v10, %s1884_s11 }
  0x26   : > { %508 = vrot.lane.b32.xlu1 %v266_v14, %s1884_s11 }
  0x28   : > { %510 = vrot.lane.b32.xlu0 %v265_v15, %s1884_s11 }
  0x2a   : > { %512 = vrot.lane.b32.xlu1 %v267_v17, %s1884_s11  ;;  %s1761_s11 = smul.u32 192, %s1943_s22 }
  0x2c   : > { %635 = vrot.lane.b32.xlu0 %v258_v10, %s1885_s12 }
  0x2e   : > { %637 = vrot.lane.b32.xlu1 %v266_v14, %s1885_s12 }
  0x30   : > { %639 = vrot.lane.b32.xlu0 %v265_v15, %s1885_s12 }
  0x32   : > { %641 = vrot.lane.b32.xlu1 %v267_v17, %s1885_s12  ;;  %s1460_s12 = sshll.u32 %s218_s10, 4  ;;  %s1461_s12 = int_to_ptr.vmem [resolvable:$true] %s1460_s12 }
  0x33   : > { %p1822_p0 = scmp.lt.s32.totalorder %s1461_s12, %s1820_s25 }
  0x34   : > { %764 = vrot.lane.b32.xlu0 %v258_v10, %s1886_s13 }
  0x36   : > { %766 = vrot.lane.b32.xlu1 %v266_v14, %s1886_s13 }
  0x38   : > { %768 = vrot.lane.b32.xlu0 %v265_v15, %s1886_s13 }
  0x3a   : > { %770 = vrot.lane.b32.xlu1 %v267_v17, %s1886_s13 }
  0x3c   : > { %893 = vrot.lane.b32.xlu0 %v258_v10, %s1887_s14 }
  0x3e   : > { %895 = vrot.lane.b32.xlu1 %v266_v14, %s1887_s14 }
  0x40   : > { %897 = vrot.lane.b32.xlu0 %v265_v15, %s1887_s14 }
  0x42   : > { %899 = vrot.lane.b32.xlu1 %v267_v17, %s1887_s14 }
  0x44   : > { %1022 = vrot.lane.b32.xlu0 %v258_v10, %s1888_s15 }
  0x46   : > { %1024 = vrot.lane.b32.xlu1 %v266_v14, %s1888_s15 }
  0x48   : > { %1026 = vrot.lane.b32.xlu0 %v265_v15, %s1888_s15 }
  0x4a   : > { %1028 = vrot.lane.b32.xlu1 %v267_v17, %s1888_s15  ;;  %s2128_s15 = scalar_lea.hbm %s2177_s3, %s1761_s11 }
  0x4c   : > { %1151 = vrot.lane.b32.xlu0 %v258_v10, %s1889_s16 }
  0x4e   : > { %1153 = vrot.lane.b32.xlu1 %v266_v14, %s1889_s16 }
  0x50   : > { %1155 = vrot.lane.b32.xlu0 %v265_v15, %s1889_s16 }
  0x52   : > { %1157 = vrot.lane.b32.xlu1 %v267_v17, %s1889_s16  ;;  %s1438_s16 = scalar_lea.sflag [#allocation3], %s216_s8 }
  0x54   : > { %1280 = vrot.lane.b32.xlu0 %v258_v10, %s1890_s17  ;;  %v1596_v10 = vld [vmem:[%s2174_s0 + $0x10] sm:$0xf] }
  0x56   : > { %1282 = vrot.lane.b32.xlu1 %v266_v14, %s1890_s17 }
  0x58   : > { %1284 = vrot.lane.b32.xlu0 %v265_v15, %s1890_s17 }
  0x5a   : > { %1286 = vrot.lane.b32.xlu1 %v267_v17, %s1890_s17  ;;  %s1815_s17 = scalar_lea.vmem %s1461_s12, 192 }
  0x5b   : > { %p1816_p11 = scmp.ne.s32.totalorder %s1461_s12, %s1815_s17  ;;  %p1823_p1 = scmp.lt.s32.totalorder %s1821_s26, %s1815_s17 }
  0x5d   : > { %p1817_p12 = pnand %p1816_p11, %p1960_p5  ;;  %p1824_p2 = por %p1823_p1, %p1822_p0 }
  0x5f   : > { %p1818_p13 = pneg %p1817_p12 }
  0x61   : > { %p1825_p3 = pnand %p1824_p2, %p1818_p13 }
  0x8e   : > { %v269_v18 = vpop.permute.xlu0 %268 }
  0x90   : > { %v273_v19 = vpop.permute.xlu1 %272 }
  0x92   : > { %v271_v20 = vpop.permute.xlu0 %270 }
  0x93   : > { %v278_v22 = vsel %vm276_vm1, %v271_v20, %v273_v19  ;;  %v277_v23 = vsel %vm276_vm1, %v269_v18, %v271_v20  ;;  %v1600_v20 = vld [vmem:[%s2174_s0 + $0x14] sm:$0xf] }
  0x94   : > { %1582 = vmatprep.subr.msk.bf16.mxu0 %vm284_vm2, %v278_v22  ;;  %v275_v24 = vpop.permute.xlu1 %274  ;;  %v286_v25 = vsel %vm284_vm2, %v277_v23, 0 }
  0x95   : > { %295 = vmatpush1.bf16.msra.mxu0 %v286_v25  ;;  %v279_v26 = vsel %vm276_vm1, %v273_v19, %v275_v24 }
  0x96   : > { %v292_v28 = vsel %vm284_vm2, %v279_v26, 0  ;;  %1585 = vmatprep.subr.msk.bf16.mxu0 %vm284_vm2, %v391_v21  ;;  %v507_v30 = vpop.permute.xlu0 %506 }
  0x97   : > { %1643 = vmatpush3.bf16.msra.mxu1 %v292_v28 }
  0x98   : > { %1583 = vmatmul.mubr.msk.bf16.vlgmr.msra.gmra.mrb[0].mxu0 %vm280_vm3, %v1581_v27  ;;  %1648 = vmatprep.subr.bf16.mxu1 %v1880_v5  ;;  %v509_v32 = vpop.permute.xlu1 %508 }
  0x99   : > { %405 = vmatpush1.bf16.msra.mxu0 %v396_v29  ;;  %436 = vmatprep.mubr.bf16.mxu0 %v1881_v6  ;;  %v515_v37 = vsel %vm514_vm4, %v507_v30, %v509_v32  ;;  %v1604_v30 = vld [vmem:[%s2174_s0 + $0x18] sm:$0xf] }
  0x9a   : > { %1645 = vmatmul.mubr.msk.bf16.vlgmr.msra.gmra.mrb[0].mxu1 %vm280_vm3, %v1581_v27  ;;  %v511_v33 = vpop.permute.xlu0 %510  ;;  %v522_v41 = vsel %vm284_vm2, %v515_v37, 0  ;;  %v1608_v37 = vld [vmem:[%s2174_s0 + $0x1c] sm:$0xf] }
  0x9b   : > { %1649 = vmatpush3.bf16.msra.mxu1 %v402_v31  ;;  %v516_v34 = vsel %vm514_vm4, %v509_v32, %v511_v33  ;;  %1650 = vmatprep.mubr.msk.bf16.mxu1 %vm1882_vm0, %v1880_v5 }
  0x9c   : > { %v513_v35 = vpop.permute.xlu1 %512  ;;  %1589 = vmatprep.subr.msk.bf16.mxu0 %vm284_vm2, %v516_v34  ;;  %1654 = vmatprep.subr.bf16.mxu1 %v1880_v5 }
  0x9d   : > { %v517_v39 = vsel %vm514_vm4, %v511_v33, %v513_v35 }
  0x9e   : > { %v636_v36 = vpop.permute.xlu0 %635  ;;  %v528_v44 = vsel %vm284_vm2, %v517_v39, 0 }
  0xa0   : > { %v638_v38 = vpop.permute.xlu1 %637 }
  0xa1   : > { %v644_v47 = vsel %vm643_vm5, %v636_v36, %v638_v38 }
  0xa2   : > { %v640_v42 = vpop.permute.xlu0 %639  ;;  %v651_v52 = vsel %vm284_vm2, %v644_v47, 0 }
  0xa3   : > { %v645_v43 = vsel %vm643_vm5, %v638_v38, %v640_v42 }
  0xa4   : > { %1586 = vmatmul.mubr.msk.bf16.vlgmr.msra.gmra.mrb[0].mxu0 %vm280_vm3, %v245_v40  ;;  %v642_v46 = vpop.permute.xlu1 %641 }
  0xa5   : > { %531 = vmatpush1.bf16.msra.mxu0 %v522_v41  ;;  %562 = vmatprep.mubr.bf16.mxu0 %v1881_v6  ;;  %v646_v50 = vsel %vm643_vm5, %v640_v42, %v642_v46  ;;  %v1392_v41 = vsub.s32 0, %v1972_v3  ;;  %v1396_v42 = vsub.s32 1, %v1972_v3 }
  0xa6   : > { %1651 = vmatmul.mubr.msk.bf16.vlgmr.msra.gmra.mrb[0].mxu1 %vm280_vm3, %v245_v40  ;;  %1593 = vmatprep.subr.msk.bf16.mxu0 %vm284_vm2, %v645_v43  ;;  %v765_v45 = vpop.permute.xlu0 %764  ;;  %v657_v54 = vsel %vm284_vm2, %v646_v50, 0  ;;  %v1612_v40 = vld [vmem:[%s2174_s0 + $0x20] sm:$0xf]  ;;  %v1400_v43 = vsub.s32 2, %v1972_v3 }
  0xa7   : > { %1655 = vmatpush3.bf16.msra.mxu1 %v528_v44  ;;  %1656 = vmatprep.mubr.msk.bf16.mxu1 %vm1882_vm0, %v1880_v5 }
  0xa8   : > { %1660 = vmatprep.subr.bf16.mxu1 %v1880_v5  ;;  %v767_v48 = vpop.permute.xlu1 %766 }
  0xa9   : > { %v773_v57 = vsel %vm772_vm6, %v765_v45, %v767_v48 }
  0xaa   : > { %v769_v49 = vpop.permute.xlu0 %768  ;;  %v780_v62 = vsel %vm284_vm2, %v773_v57, 0 }
  0xab   : > { %v774_v53 = vsel %vm772_vm6, %v767_v48, %v769_v49 }
  0xac   : > { %v771_v56 = vpop.permute.xlu1 %770 }
  0xad   : > { %v775_v60 = vsel %vm772_vm6, %v769_v49, %v771_v56 }
  0xae   : > { %v894_v55 = vpop.permute.xlu0 %893  ;;  %v786_v0 = vsel %vm284_vm2, %v775_v60, 0 }
  0xb0   : > { %1590 = vmatmul.mubr.msk.bf16.vlgmr.msra.gmra.mrb[0].mxu0 %vm280_vm3, %v1588_v51  ;;  %v896_v58 = vpop.permute.xlu1 %895 }
  0xb1   : > { %660 = vmatpush1.bf16.msra.mxu0 %v651_v52  ;;  %691 = vmatprep.mubr.bf16.mxu0 %v1881_v6  ;;  %v902_v4 = vsel %vm901_vm7, %v894_v55, %v896_v58 }
  0xb2   : > { %1657 = vmatmul.mubr.msk.bf16.vlgmr.msra.gmra.mrb[0].mxu1 %vm280_vm3, %v1588_v51  ;;  %1597 = vmatprep.subr.msk.bf16.mxu0 %vm284_vm2, %v774_v53  ;;  %v898_v59 = vpop.permute.xlu0 %897  ;;  %v909_v11 = vsel %vm284_vm2, %v902_v4, 0 }
  0xb3   : > { %1661 = vmatpush3.bf16.msra.mxu1 %v657_v54  ;;  %1662 = vmatprep.mubr.msk.bf16.mxu1 %vm1882_vm0, %v1880_v5  ;;  %v903_v63 = vsel %vm901_vm7, %v896_v58, %v898_v59 }
  0xb4   : > { %1666 = vmatprep.subr.bf16.mxu1 %v1880_v5  ;;  %v900_v2 = vpop.permute.xlu1 %899 }
  0xb5   : > { %v904_v9 = vsel %vm901_vm7, %v898_v59, %v900_v2 }
  0xb6   : > { %v1023_v1 = vpop.permute.xlu0 %1022  ;;  %v915_v13 = vsel %vm284_vm2, %v904_v9, 0 }
  0xb8   : > { %v1025_v7 = vpop.permute.xlu1 %1024 }
  0xb9   : > { %v1031_v16 = vsel %vm1030_vm8, %v1023_v1, %v1025_v7 }
  0xba   : > { %v1027_v8 = vpop.permute.xlu0 %1026  ;;  %v1038_v21 = vsel %vm284_vm2, %v1031_v16, 0 }
  0xbb   : > { %v1032_v12 = vsel %vm1030_vm8, %v1025_v7, %v1027_v8 }
  0xbc   : > { %1594 = vmatmul.mubr.msk.bf16.vlgmr.msra.gmra.mrb[0].mxu0 %vm280_vm3, %v1592_v61  ;;  %v1029_v15 = vpop.permute.xlu1 %1028 }
  0xbd   : > { %789 = vmatpush1.bf16.msra.mxu0 %v780_v62  ;;  %820 = vmatprep.mubr.bf16.mxu0 %v1881_v6  ;;  %v1033_v19 = vsel %vm1030_vm8, %v1027_v8, %v1029_v15 }
  0xbe   : > { %1663 = vmatmul.mubr.msk.bf16.vlgmr.msra.gmra.mrb[0].mxu1 %vm280_vm3, %v1592_v61  ;;  %1601 = vmatprep.subr.msk.bf16.mxu0 %vm284_vm2, %v903_v63  ;;  %v1152_v14 = vpop.permute.xlu0 %1151  ;;  %v1044_v23 = vsel %vm284_vm2, %v1033_v19, 0 }
  0xbf   : > { %1667 = vmatpush3.bf16.msra.mxu1 %v786_v0  ;;  %1668 = vmatprep.mubr.msk.bf16.mxu1 %vm1882_vm0, %v1880_v5 }
  0xc0   : > { %1672 = vmatprep.subr.bf16.mxu1 %v1880_v5  ;;  %v1154_v17 = vpop.permute.xlu1 %1153 }
  0xc1   : > { %v1160_v26 = vsel %vm1159_vm9, %v1152_v14, %v1154_v17 }
  0xc2   : > { %v1156_v18 = vpop.permute.xlu0 %1155  ;;  %v1167_v31 = vsel %vm284_vm2, %v1160_v26, 0 }
  0xc3   : > { %v1161_v22 = vsel %vm1159_vm9, %v1154_v17, %v1156_v18 }
  0xc4   : > { %v1158_v25 = vpop.permute.xlu1 %1157 }
  0xc5   : > { %v1162_v29 = vsel %vm1159_vm9, %v1156_v18, %v1158_v25 }
  0xc6   : > { %v1281_v24 = vpop.permute.xlu0 %1280  ;;  %v1173_v33 = vsel %vm284_vm2, %v1162_v29, 0 }
  0xc8   : > { %1598 = vmatmul.mubr.msk.bf16.vlgmr.msra.gmra.mrb[0].mxu0 %vm280_vm3, %v1596_v10  ;;  %v1283_v27 = vpop.permute.xlu1 %1282 }
  0xc9   : > { %918 = vmatpush1.bf16.msra.mxu0 %v909_v11  ;;  %949 = vmatprep.mubr.bf16.mxu0 %v1881_v6  ;;  %v1289_v35 = vsel %vm1288_vm10, %v1281_v24, %v1283_v27 }
  0xca   : > { %1669 = vmatmul.mubr.msk.bf16.vlgmr.msra.gmra.mrb[0].mxu1 %vm280_vm3, %v1596_v10  ;;  %1605 = vmatprep.subr.msk.bf16.mxu0 %vm284_vm2, %v1032_v12  ;;  %v1285_v28 = vpop.permute.xlu0 %1284  ;;  %v1296_v38 = vsel %vm284_vm2, %v1289_v35, 0 }
  0xcb   : > { %1673 = vmatpush3.bf16.msra.mxu1 %v915_v13  ;;  %1674 = vmatprep.mubr.msk.bf16.mxu1 %vm1882_vm0, %v1880_v5  ;;  %v1290_v32 = vsel %vm1288_vm10, %v1283_v27, %v1285_v28 }
  0xcc   : > { %1678 = vmatprep.subr.bf16.mxu1 %v1880_v5  ;;  %v1287_v34 = vpop.permute.xlu1 %1286 }
  0xcd   : > { %v1291_v36 = vsel %vm1288_vm10, %v1285_v28, %v1287_v34 }
  0xce   : > { %v1302_v39 = vsel %vm284_vm2, %v1291_v36, 0 }
  0xd4   : > { %1602 = vmatmul.mubr.msk.bf16.vlgmr.msra.gmra.mrb[0].mxu0 %vm280_vm3, %v1600_v20 }
  0xd5   : > { %1047 = vmatpush1.bf16.msra.mxu0 %v1038_v21  ;;  %1078 = vmatprep.mubr.bf16.mxu0 %v1881_v6 }
  0xd6   : > { %1675 = vmatmul.mubr.msk.bf16.vlgmr.msra.gmra.mrb[0].mxu1 %vm280_vm3, %v1600_v20  ;;  %1609 = vmatprep.subr.msk.bf16.mxu0 %vm284_vm2, %v1161_v22 }
  0xd7   : > { %1679 = vmatpush3.bf16.msra.mxu1 %v1044_v23  ;;  %1680 = vmatprep.mubr.msk.bf16.mxu1 %vm1882_vm0, %v1880_v5 }
  0xd8   : > { %1684 = vmatprep.subr.bf16.mxu1 %v1880_v5 }
  0xe0   : > { %1606 = vmatmul.mubr.msk.bf16.vlgmr.msra.gmra.mrb[0].mxu0 %vm280_vm3, %v1604_v30 }
  0xe1   : > { %1176 = vmatpush1.bf16.msra.mxu0 %v1167_v31  ;;  %1207 = vmatprep.mubr.bf16.mxu0 %v1881_v6 }
  0xe2   : > { %1681 = vmatmul.mubr.msk.bf16.vlgmr.msra.gmra.mrb[0].mxu1 %vm280_vm3, %v1604_v30  ;;  %1613 = vmatprep.subr.msk.bf16.mxu0 %vm284_vm2, %v1290_v32 }
  0xe3   : > { %1685 = vmatpush3.bf16.msra.mxu1 %v1173_v33  ;;  %1686 = vmatprep.mubr.msk.bf16.mxu1 %vm1882_vm0, %v1880_v5 }
  0xe4   : > { %1690 = vmatprep.subr.bf16.mxu1 %v1880_v5 }
  0xec   : > { %1610 = vmatmul.mubr.msk.bf16.vlgmr.msra.gmra.mrb[0].mxu0 %vm280_vm3, %v1608_v37 }
  0xed   : > { %1305 = vmatpush1.bf16.msra.mxu0 %v1296_v38  ;;  %1336 = vmatprep.mubr.bf16.mxu0 %v1881_v6  ;;  %v1388_v6 = vld [vmem:[%s2176_s2] sm:$0x7] }
  0xee   : > { %1687 = vmatmul.mubr.msk.bf16.vlgmr.msra.gmra.mrb[0].mxu1 %vm280_vm3, %v1608_v37  ;;  %v1397_v44 = vrot.slane %v1388_v6, %v1396_v42  ;;  %v1401_v45 = vrot.slane %v1388_v6, %v1400_v43 }
  0xef   : > { %1691 = vmatpush3.bf16.msra.mxu1 %v1302_v39  ;;  %1692 = vmatprep.mubr.msk.bf16.mxu1 %vm1882_vm0, %v1880_v5  ;;  %v1393_v5 = vrot.slane %v1388_v6, %v1392_v41 }
  0xf8   : > { %1614 = vmatmul.mubr.msk.bf16.vlgmr.msra.gmra.mrb[0].mxu0 %vm280_vm3, %v1612_v40 }
  0xfa   : > { %1693 = vmatmul.mubr.msk.bf16.vlgmr.msra.gmra.mrb[0].mxu1 %vm280_vm3, %v1612_v40 }
 0x1cb   : > { %v1338_v46 = vpop.f32.mrb[0].mxu0 }
 0x1cc   : > { %v1405_v47 = vmul.f32 %v1393_v5, %v1338_v46  ;;  %v1340_v48 = vpop.f32.mrb[1].mxu0 }
 0x1cd   : > { %v1406_v49 = vmul.f32 %v1397_v44, %v1340_v48  ;;  %v1342_v50 = vpop.f32.mrb[2].mxu0  ;;  %v1379_v51 = vpop.f32.mrb[0].mxu1 }
 0x1ce   : > { %v1429_v52 = vmul.f32 %v1405_v47, %v1405_v47  ;;  %v1407_v53 = vmul.f32 %v1401_v45, %v1379_v51  ;;  %v1343_v54 = vpop.f32.mrb[3].mxu0  ;;  %v1694_v55 = vpop.f32.mrb[1].mxu1 }
 0x1cf   : > { %v1622_v56 = vpack.c.bf16 %v1406_v49, %v1405_v47  ;;  %v1430_v57 = vmul.f32 %v1406_v49, %v1406_v49  ;;  %v1382_v3 = vpop.f32.mrb[2].mxu1  ;;  %v1423_v58 = vadd.f32 %v1406_v49, %v1405_v47 }
 0x1d0   : > { %v1623_v59 = vpack.c.bf16 %v1407_v53, %v1407_v53  ;;  %v1695_v60 = vpop.f32.mrb[3].mxu1  ;;  %v1431_v61 = vmul.f32 %v1407_v53, %v1407_v53 }
 0x1d1   : > { %v1424_v62 = vadd.f32 %v1423_v58, %v1407_v53  ;;  %v1432_v63 = vadd.f32 %v1430_v57, %v1429_v52  ;;  %1421 = vst [vmem:[%s218_s10] sm:$0xff] %v1622_v56 }
 0x1d2   : > { %1422 = vst [vmem:[%s218_s10 + $0x8] sm:$0xf] %v1623_v59 }
 0x1d3   : > { %1425 = vadd.xlane.f32.xlu0 %v1424_v62  ;;  %v1433_v0 = vadd.f32 %v1432_v63, %v1431_v61 }
 0x1d5   : > { %1434 = vadd.xlane.f32.xlu1 %v1433_v0 }
 0x1d6   : > { %1828 = shalt.err (!%p1825_p3)
}
 0x1d7   : > { %s1829_s22 = scalar_lea.hbm %s2128_s15, 192  ;;  %s1833_s8 = scalar_lea.hbm %s2177_s3, 384 }
 0x1d8   : > { %p1830_p4 = scmp.ne.s32.totalorder %s2128_s15, %s1829_s22  ;;  %p1834_p9 = scmp.lt.u32.totalorder %s2128_s15, %s2177_s3 }
 0x1d9   : > { %p1835_p10 = scmp.lt.u32.totalorder %s1833_s8, %s1829_s22  ;;  %p1837_p12 = scmp.lt.u32.totalorder %s1829_s22, %s2128_s15 }
 0x1da   : > { %p1831_p7 = pnand %p1830_p4, %p1960_p5 }
 0x1db   : > { %p1836_p11 = por %p1835_p10, %p1834_p9 }
 0x1dc   : > { %p1832_p8 = pneg %p1831_p7 }
 0x1dd   : > { %p1838_p13 = por %p1837_p12, %p1836_p11 }
 0x1df   : > { %p1839_p0 = pnand %p1838_p13, %p1832_p8 }
 0x1e1   : > { %1842 = shalt.err (!%p1839_p0)
}
 0x1e2   : > { %1762 = dma.vmem_to_hbm [thread:$0]  (%p1960_p5), %s1461_s12, 192, %s2128_s15, %s1438_s16   ;;  %vm1427_vm11 = vcmask 7168  }
 0x1e3   : > { %s239_s14 = scalar_lea.vmem %s2178_s4, %s1976_s6  ;;  %s243_s25 = scalar_lea.vmem %s2179_s5, %s1976_s6 }
 0x260   : > { %v1426_v1 = vpop.xlane.xlu0 %1425 }
 0x261   : > { %1428 = vst.msk [vmem:[%s239_s14] sm:$0xff] %vm1427_vm11, %v1426_v1 }
 0x262   : > { %v1435_v2 = vpop.xlane.xlu1 %1434 }
 0x263   : > { %1436 = vst.msk [vmem:[%s243_s25] sm:$0xff] %vm1427_vm11, %v1435_v2 }
 0x264 PF: > { %p1768_p1 = scmp.ge.s32.totalorder %s1877_s21, 2  ;;  %s1478_s28 = sand.u32 1, %s1865_s18  }
 0x265   : > { %s1479_s12 = scalar_lea.sflag [#allocation3], %s1478_s28 }
 0x266   : > { %p1765_p5 = pnand %p1768_p1, %p1964_p6 }
 0x268   : > { %1860 = dma.done.wait (!%p1765_p5), %s1479_s12, 192  }
 0x269   : > { %1862 = vsyncadd (!%p1765_p5), %s1479_s12, 4294967104  ;;  %p16_p2 = scmp.ge.s32.totalorder %s1947_s24, 4   ;;  %s2182_s18 = smov %s1869_s19 }
 0x26a   : > { %s2183_s19 = smov %s1873_s20  ;;  %s2184_s20 = smov %s1958_s27 }
 0x26b   : > { %s2185_s21 = smov %s1947_s24  ;;  %18 = sbr.rel (!%p16_p2) target bundleno = 3 (0x3), region = 99 }
 0x272   :  { %1498 = vsyncpa [#allocation3], 1 }
 0x273   :  { %1500 = vsyncpa [#allocation3 + $0x1], 1 }

// kernel: tpu_custom_call.1
= control target key start
LH: loop header
LB: loop body
LE: loop exit
PB: predicated region body
PF: predicated region fallthrough
CT: control target
= control target key end

     0   :  { %10 = vsyncpa [#allocation3], 0  ;;  %s850_s0 = inlined_call_operand.vmem [shape: bf16[8,36], index: 0, kind: input, shape index: {}]   ;;  %s851_s1 = inlined_call_operand.vmem [shape: bf16[2,36,256], index: 1, kind: input, shape index: {}]   ;;  %s852_s2 = inlined_call_operand.hbm [shape: bf16[2,8,256], index: 2, kind: output, shape index: {0}]   ;;  %s853_s3 = inlined_call_operand.vmem [shape: f32[2,8,1], index: 3, kind: output, shape index: {1}]   ;;  %s854_s4 = inlined_call_operand.vmem [shape: f32[2,8,1], index: 4, kind: output, shape index: {2}]  }
   0x1   :  { %12 = vsyncpa [#allocation3 + $0x1], 0  ;;  %s717_s15 = smov 0   ;;  %s719_s16 = smov 0  }
   0x2   :  { %s721_s17 = smov 0   ;;  %s723_s18 = smov 0  }
   0x3   :  { %s725_s19 = smov 0   ;;  %s727_s20 = smov 0  }
   0x4 LB: > { %s518_s21 = sadd.s32 4294967295, %s687_s20   ;;  %s519_s22 = sadd.s32 4294967294, %s687_s20   ;;  %s687_s20 = sphi %s727_s20, %s18_s20   ;;  %s683_s19 = sphi %s725_s19, %s861_s19   ;;  %s679_s18 = sphi %s723_s18, %s860_s18   ;;  %s675_s17 = sphi %s721_s17, %s859_s17   ;;  %s671_s16 = sphi %s719_s16, %s858_s16   ;;  %s667_s15 = sphi %s717_s15, %s857_s15  }
   0x5   : > { %s30_s23 = sadd.s32 1, %s683_s19  ;;  %s88_s24 = sadd.s32 1, %s675_s17 }
   0x6   : > { %p32_p0 = scmp.ge.s32.totalorder %s30_s23, 2  ;;  %p98_p1 = scmp.ne.s32.totalorder %s675_s17, %s671_s16 }
   0x7   : > { %p99_p2 = scmp.eq.s32.totalorder %s518_s21, 1  ;;  %p104_p3 = scmp.ne.s32.totalorder %s671_s16, %s667_s15 }
   0x8   : > { %s863_s23 = smov (%p32_p0, %s30_s23), 0  ;;  %p105_p5 = scmp.eq.s32.totalorder %s519_s22, 1 }
   0x9   : > { %p757_p4 = por %p99_p2, %p98_p1  ;;  %s83_s26 = ssub.s32 %s683_s19, %s863_s23 }
   0xa   : > { %p522_p6 = scmp.ge.s32.totalorder %s687_s20, 1  ;;  %p86_p7 = scmp.eq.s32.totalorder %s83_s26, 0 }
   0xb   : > { %p764_p8 = por %p105_p5, %p104_p3  ;;  %p191_p9 = scmp.lt.s32.totalorder %s687_s20, 3 }
   0xc   : > { %s770_s28 = scalar_select %p86_p7, %s675_s17, %s88_s24  }
   0xd   : > { %p192_p10 = pnand %p522_p6, %p191_p9 }
   0xe   : > { %p230_p11 = scmp.lt.s32.totalorder (!%p192_p10), %s679_s18, 1  ;;  %v689_v0 = vmov (!%p192_p10), 0   ;;  %vm284_vm0 = vcmask (!%p192_p10), 1041408   ;;  %v249_v9 = vld [vmem:[%s850_s0] sm:$0xf] (!%p192_p10)  ;;  %vm280_vm1 = vcmask (!%p192_p10), 293888  }
   0xf   : > { %195 = sbr.rel (%p192_p10) target bundleno = 404 (0x194), region = 28  ;;  %323 = vmatprep.mubr.bf16.mxu0 (!%p192_p10), %v689_v0  ;;  %vm345_vm2 = vcmask (!%p192_p10), 7168   ;;  %v690_v10 = vmov (!%p192_p10), 0.0   ;;  %s214_s14 = sand.u32 (!%p192_p10), 1, %s671_s16  }
  0x10   : > { %s523_s21 = sshll.u32 (!%p192_p10), %s214_s14, 3  ;;  %s364_s9 = scalar_lea.sflag (!%p192_p10), [#allocation3], %s214_s14 }
  0x11   : > { %s216_s22 = scalar_lea.vmem (!%p192_p10), [#allocation2], %s523_s21  ;;  %s691_s12 = smov (!%p192_p10), [#allocation2]  }
  0x12   : > { %s388_s5 = sshll.u32 (!%p192_p10), %s216_s22, 4  ;;  %s389_s5 = int_to_ptr.vmem [resolvable:$true] %s388_s5 }
  0x13   : > { %s609_s11 = scalar_lea.vmem (!%p192_p10), %s389_s5, 128 }
  0x14   : > { %p610_p12 = scmp.ne.s32.totalorder (!%p192_p10), %s389_s5, %s609_s11 }
  0x16   : > { %s774_s29 = scalar_select %p230_p11, %s679_s18, 1 }
  0x17   : > { %p611_p13 = pnand %p610_p12, %p757_p4 }
  0x18   : > { %s543_s30 = smul.u32 40, %s774_s29  ;;  %s525_s10 = sshll.u32 %s774_s29, 3 }
  0x19   : > { %s787_s13 = scalar_lea.vmem %s853_s3, %s525_s10  ;;  %s795_s29 = scalar_lea.vmem %s854_s4, %s525_s10 }
  0x1a   : > { %s237_s7 = scalar_lea.vmem %s851_s1, %s543_s30  ;;  %346 = vst.msk [vmem:[%s787_s13] sm:$0xff] %vm345_vm2, %v690_v10  ;;  %347 = vst.msk [vmem:[%s795_s29] sm:$0xff] %vm345_vm2, %v690_v10  ;;  %s542_s30 = sshll.u32 %s679_s18, 7 }
  0x1b   : > { %v601_v1 = vld [vmem:[%s237_s7 + $0x4] ss:$8 sps:$4 sm:$0xff]   ;;  %v603_v2 = vld [vmem:[%s237_s7] ss:$8 sps:$4 sm:$0xff]   ;;  %v604_v3 = vld [vmem:[%s237_s7 + $0x14] ss:$8 sps:$4 sm:$0xff]   ;;  %s803_s8 = scalar_lea.hbm %s852_s2, %s542_s30  ;;  %p612_p0 = pneg %p611_p13 }
  0x1c   : > { %291 = vmatprep.subr.bf16.mxu0 %v601_v1  ;;  %v254_v4 = vld [vmem:[%s237_s7 + $0x20] sm:$0x33]  ;;  %v606_v5 = vld [vmem:[%s237_s7 + $0x10] ss:$8 sps:$4 sm:$0xff]   ;;  %s613_s10 = sshll.u32 %s691_s12, 4  ;;  %s614_s10 = int_to_ptr.vmem [resolvable:$false] %s613_s10 }
  0x1d   : > { %292 = vmatpush1.bf16.msra.mxu0 %v603_v2  ;;  %v532_v6 = vcombine.high %v254_v4, %v254_v4  ;;  %v531_v7 = vcombine.low %v254_v4, %v254_v4  ;;  %s615_s21 = scalar_lea.vmem %s614_s10, 256  ;;  %p616_p1 = scmp.lt.s32.totalorder %s389_s5, %s614_s10 }
  0x1e   : > { %293 = vmatprep.subr.bf16.mxu0 %v604_v3  ;;  %p617_p2 = scmp.lt.s32.totalorder %s615_s21, %s609_s11 }
  0x1f   : > { %v286_v8 = vsel %vm284_vm0, %v531_v7, 0 }
  0x20   : > { %p618_p3 = por %p617_p2, %p616_p1 }
  0x21   : > { %294 = vmatpush1.bf16.msra.mxu0 %v606_v5 }
  0x22   : > { %533 = vmatprep.subr.msk.bf16.mxu0 %vm284_vm0, %v532_v6  ;;  %p619_p5 = pnand %p618_p3, %p612_p0 }
  0x25   : > { %296 = vmatpush1.bf16.msra.mxu0 %v286_v8 }
  0x28   : > { %534 = vmatmul.mubr.msk.bf16.vlgmr.msra.gmra.mrb[0].mxu0 %vm280_vm1, %v249_v9 }
  0xfb   : > { %v325_v11 = vpop.f32.mrb[0].mxu0 }
  0xfc   : > { %v327_v12 = vpop.f32.mrb[1].mxu0  ;;  %v356_v13 = vmul.f32 %v325_v11, %v325_v11 }
  0xfd   : > { %v541_v14 = vpack.c.bf16 %v327_v12, %v325_v11  ;;  %v329_v15 = vpop.f32.mrb[2].mxu0  ;;  %v349_v16 = vadd.f32 %v327_v12, %v325_v11  ;;  %v357_v17 = vmul.f32 %v327_v12, %v327_v12 }
  0xfe   : > { %v330_v18 = vpop.f32.mrb[3].mxu0 }
  0xff   : > { %350 = vadd.xlane.f32.xlu0 %v349_v16  ;;  %v358_v19 = vadd.f32 %v357_v17, %v356_v13  ;;  %340 = vst [vmem:[%s216_s22] sm:$0xff] %v541_v14 }
 0x103   : > { %359 = vadd.xlane.f32.xlu0 %v358_v19 }
 0x104   : > { %622 = shalt.err (!%p619_p5)
}
 0x105   : > { %s623_s18 = scalar_lea.hbm %s803_s8, 128  ;;  %s627_s24 = scalar_lea.hbm %s852_s2, 256 }
 0x106   : > { %p624_p6 = scmp.ne.s32.totalorder %s803_s8, %s623_s18  ;;  %p628_p10 = scmp.lt.u32.totalorder %s803_s8, %s852_s2 }
 0x107   : > { %p629_p11 = scmp.lt.u32.totalorder %s627_s24, %s623_s18  ;;  %p631_p13 = scmp.lt.u32.totalorder %s623_s18, %s803_s8 }
 0x108   : > { %p625_p7 = pnand %p624_p6, %p757_p4 }
 0x109   : > { %p630_p12 = por %p629_p11, %p628_p10 }
 0x10a   : > { %p626_p9 = pneg %p625_p7 }
 0x10b   : > { %p632_p0 = por %p631_p13, %p630_p12 }
 0x10d   : > { %p633_p1 = pnand %p632_p0, %p626_p9 }
 0x10f   : > { %636 = shalt.err (!%p633_p1)
}
 0x110   : > { %544 = dma.vmem_to_hbm [thread:$0]  (%p757_p4), %s389_s5, 128, %s803_s8, %s364_s9   ;;  %v348_v20 = vld [vmem:[%s787_s13] sm:$0xff] }
 0x111   : > { %v355_v23 = vld [vmem:[%s795_s29] sm:$0xff] }
 0x18c   : > { %v351_v21 = vpop.xlane.xlu0 %350 }
 0x18d   : > { %v352_v22 = vadd.f32 %v351_v21, %v348_v20 }
 0x18f   : > { %354 = vst.msk [vmem:[%s787_s13] sm:$0xff] %vm345_vm2, %v352_v22 }
 0x190   : > { %v360_v24 = vpop.xlane.xlu0 %359 }
 0x191   : > { %v361_v25 = vadd.f32 %v360_v24, %v355_v23 }
 0x193   : > { %362 = vst.msk [vmem:[%s795_s29] sm:$0xff] %vm345_vm2, %v361_v25 }
 0x194 PF: > { %p550_p2 = scmp.ge.s32.totalorder %s687_s20, 2  ;;  %s406_s25 = sand.u32 1, %s667_s15  }
 0x195   : > { %s407_s6 = scalar_lea.sflag [#allocation3], %s406_s25 }
 0x196   : > { %p547_p3 = pnand %p550_p2, %p764_p8 }
 0x198   : > { %662 = dma.done.wait (!%p547_p3), %s407_s6, 128  }
 0x199   : > { %664 = vsyncadd (!%p547_p3), %s407_s6, 4294967168  ;;  %s18_s20 = sadd.s32 1, %s687_s20   ;;  %s857_s15 = smov %s671_s16 }
 0x19a   : > { %p15_p4 = scmp.ge.s32.totalorder %s18_s20, 4   ;;  %s858_s16 = smov %s675_s17 }
 0x19b   : > { %s859_s17 = smov %s770_s28  ;;  %s860_s18 = smov %s683_s19 }
 0x19c   : > { %s861_s19 = smov %s863_s23  ;;  %17 = sbr.rel (!%p15_p4) target bundleno = 4 (0x4), region = 91 }
 0x1a3   :  { %426 = vsyncpa [#allocation3], 1 }
 0x1a4   :  { %428 = vsyncpa [#allocation3 + $0x1], 1 }

</bundles_post_ra>
